<compile_context>
chip_gen: v7x
topology: tpu7x:2x2x1
jax: 0.10.0
libtpu: 0.0.40
codegen_flags: <defaults>
</compile_context>

<pallas_src>
import jax
import jax.numpy as jnp
from jax.experimental import pallas as pl
from jax.experimental.pallas import tpu as pltpu


def controller_kernel(x_ref, w1_ref, b1_ref, w2_ref, o_ref):
    # Layer 1: (TB, D) @ (D, 16) on the MXU with f32 accumulation; bias + ReLU
    # run on the VPU.
    z1 = jnp.dot(x_ref[...], w1_ref[...], preferred_element_type=jnp.float32)
    z1 = jnp.maximum(z1 + b1_ref[...], 0.0)
    # Layer 2 (16 -> 1, no bias): contract the hidden dim as
    # (1,16) . (TB,16)^T -> (1, TB) so logits come out lane-dense.
    logits = jax.lax.dot_general(
        w2_ref[...], z1,
        dimension_numbers=(((1,), (1,)), ((), ())),
        preferred_element_type=jnp.float32,
    )
    o_ref[...] = jax.nn.sigmoid(logits).reshape(o_ref.shape).astype(o_ref.dtype)


def _pick_batch_tile(B, D, itemsize):
    """Largest 128-multiple tile s.t. one x buffer stays <= ~4 MiB
    (double-buffered -> ~8 MiB), without over-padding tiny batches."""
    rows_by_vmem = ((4 * 1024 * 1024) // (D * itemsize)) // 128 * 128
    rows_by_batch = -(-B // 128) * 128          # round B up to a multiple of 128
    return max(128, min(1024, rows_by_vmem, rows_by_batch))


def prepare_params(w1, b1, w2):
    """One-time conversion from PyTorch nn.Linear layout to kernel layout."""
    w1_t = jnp.transpose(w1)                 # (D, 16)
    b1_r = jnp.reshape(b1, (1, -1))          # (1, 16)
    w2_r = jnp.reshape(w2, (1, -1))          # (1, 16) -- contracted on dim 1
    return w1_t, b1_r, w2_r


def controller_forward(x, params, *, stream_dtype=None):
    """
    x      : (B, dim1) float32
    params : (w1_t (dim1,16), b1 (1,16), w2 (1,16)) from prepare_params()
    stream_dtype : optionally jnp.bfloat16 to halve HBM traffic of x/w1 on
                   v6e/v7x (f32 accumulation kept). Default None = exact f32.
    returns (B, 1) float32, matching Controller.forward.
    """
    w1_t, b1_r, w2_r = params
    B, D = x.shape
    H = w1_t.shape[1]          # 16

    if stream_dtype is not None:
        x = x.astype(stream_dtype)
        w1_t = w1_t.astype(stream_dtype)

    tb = _pick_batch_tile(B, D, x.dtype.itemsize)
    b_pad = -(-B // tb) * tb
    if b_pad != B:
        x = jnp.pad(x, ((0, b_pad - B), (0, 0)))
    n_tiles = b_pad // tb

    cost = pl.CostEstimate(
        flops=2 * b_pad * D * H + 2 * b_pad * H,
        transcendentals=b_pad,
        bytes_accessed=(b_pad * D * x.dtype.itemsize
                        + D * H * w1_t.dtype.itemsize
                        + 2 * H * 4
                        + b_pad * 4),
    )

    out = pl.pallas_call(
        controller_kernel,
        out_shape=jax.ShapeDtypeStruct((n_tiles, 1, tb), jnp.float32),
        grid=(n_tiles,),
        in_specs=[
            pl.BlockSpec((tb, D), lambda i: (i, 0)),   # x: streamed per tile
            pl.BlockSpec((D, H), lambda i: (0, 0)),    # w1: VMEM-resident
            pl.BlockSpec((1, H), lambda i: (0, 0)),    # b1: VMEM-resident
            pl.BlockSpec((1, H), lambda i: (0, 0)),    # w2: VMEM-resident
        ],
        out_specs=pl.BlockSpec((1, 1, tb), lambda i: (i, 0, 0)),  # lane-dense
        compiler_params=pltpu.CompilerParams(
            dimension_semantics=("parallel",),
            vmem_limit_bytes=48 * 1024 * 1024,
        ),
        cost_estimate=cost,
    )(x, w1_t, b1_r, w2_r)

    # (n_tiles, 1, tb) -> (B, 1), dropping zero-padded rows.
    return out.reshape(-1)[:B].reshape(B, 1)


def init_params(key, dim1):
    """Deterministic synthetic init matching nn.Linear shapes (Kaiming-uniform-ish)."""
    k1, k2, k3 = jax.random.split(key, 3)
    bound1 = 1.0 / (dim1 ** 0.5)
    w1 = jax.random.uniform(k1, (16, dim1), jnp.float32, -bound1, bound1)
    b1 = jax.random.uniform(k2, (16,), jnp.float32, -bound1, bound1)
    bound2 = 1.0 / (16 ** 0.5)
    w2 = jax.random.uniform(k3, (1, 16), jnp.float32, -bound2, bound2)
    return w1, b1, w2


if __name__ == "__main__":
    key = jax.random.PRNGKey(0)
    kx, kp = jax.random.split(key)

    B, dim1 = 8, 32
    x = jax.random.normal(kx, (B, dim1), jnp.float32)
    w1, b1, w2 = init_params(kp, dim1)
    params = prepare_params(w1, b1, w2)       # one-time layout prep (not per call)

    fwd = jax.jit(controller_forward)
    out = jax.block_until_ready(fwd(x, params))

    # Reference check in plain JAX (same math as the PyTorch forward).
    z1_ref = jnp.maximum(x @ w1.T + b1, 0.0)
    ref = jax.nn.sigmoid(z1_ref @ w2.T)
    assert out.shape == (B, 1)
    assert jnp.allclose(out, ref, atol=1e-5, rtol=1e-5)

    print("KERNEL_OK")
</pallas_src>

<mosaic_0001>
module attributes {stable_mosaic.version = 11 : i64} {
  func.func @controller_kernel(%arg0: i32, %arg1: memref<128x32xf32, #tpu.memory_space<vmem>>, %arg2: memref<32x16xf32, #tpu.memory_space<vmem>>, %arg3: memref<1x16xf32, #tpu.memory_space<vmem>>, %arg4: memref<1x16xf32, #tpu.memory_space<vmem>>, %arg5: memref<1x1x128xf32, #tpu.memory_space<vmem>>) attributes {dimension_semantics = [#tpu.dimension_semantics<parallel>], iteration_bounds = array<i64: 1>, scalar_prefetch = 0 : i64, scratch_operands = 0 : i64, tpu.core_type = #tpu.core_type<tc>, window_params = [{transform_indices = @transform_0, window_bounds = array<i64: 128, 32>}, {pipeline_mode = #tpu.pipeline_mode<synchronous>, transform_indices = @transform_1, window_bounds = array<i64: 32, 16>}, {pipeline_mode = #tpu.pipeline_mode<synchronous>, transform_indices = @transform_2, window_bounds = array<i64: 1, 16>}, {pipeline_mode = #tpu.pipeline_mode<synchronous>, transform_indices = @transform_3, window_bounds = array<i64: 1, 16>}, {transform_indices = @transform_4, window_bounds = array<i64: 1, 1, 128>}]} {
    %c0 = arith.constant 0 : index
    %c0_0 = arith.constant 0 : index
    %0 = vector.load %arg1[%c0, %c0_0] : memref<128x32xf32, #tpu.memory_space<vmem>>, vector<128x32xf32>
    %c0_1 = arith.constant 0 : index
    %c0_2 = arith.constant 0 : index
    %1 = vector.load %arg2[%c0_1, %c0_2] : memref<32x16xf32, #tpu.memory_space<vmem>>, vector<32x16xf32>
    %cst = arith.constant dense<0.000000e+00> : vector<128x16xf32>
    %2 = tpu.matmul %0, %1, %cst {dimension_numbers = #tpu.dot_dimension_numbers<[1], [0], [0], [1], [0, 0, 1, 1], [], []>} : vector<128x32xf32>, vector<32x16xf32>, vector<128x16xf32> -> vector<128x16xf32>
    %c0_3 = arith.constant 0 : index
    %c0_4 = arith.constant 0 : index
    %3 = vector.load %arg3[%c0_3, %c0_4] : memref<1x16xf32, #tpu.memory_space<vmem>>, vector<1x16xf32>
    %4 = vector.broadcast %3 : vector<1x16xf32> to vector<128x16xf32>
    %5 = arith.addf %2, %4 : vector<128x16xf32>
    %cst_5 = arith.constant 0.000000e+00 : f32
    %6 = vector.broadcast %cst_5 : f32 to vector<128x16xf32>
    %7 = arith.maximumf %5, %6 : vector<128x16xf32>
    %c0_6 = arith.constant 0 : index
    %c0_7 = arith.constant 0 : index
    %8 = vector.load %arg4[%c0_6, %c0_7] : memref<1x16xf32, #tpu.memory_space<vmem>>, vector<1x16xf32>
    %cst_8 = arith.constant dense<0.000000e+00> : vector<1x128xf32>
    %9 = tpu.matmul %8, %7, %cst_8 {dimension_numbers = #tpu.dot_dimension_numbers<[1], [1], [0], [0], [0, 0, 1, 0], [], []>} : vector<1x16xf32>, vector<128x16xf32>, vector<1x128xf32> -> vector<1x128xf32>
    %10 = arith.negf %9 : vector<1x128xf32>
    %11 = math.exp %10 : vector<1x128xf32>
    %cst_9 = arith.constant 1.000000e+00 : f32
    %12 = vector.broadcast %cst_9 : f32 to vector<1x128xf32>
    %13 = arith.addf %12, %11 : vector<1x128xf32>
    %14 = arith.divf %12, %13 : vector<1x128xf32>
    %15 = vector.shape_cast %14 : vector<1x128xf32> to vector<1x1x128xf32>
    %c0_10 = arith.constant 0 : index
    %c0_11 = arith.constant 0 : index
    %c0_12 = arith.constant 0 : index
    %16 = vector.load %arg5[%c0_10, %c0_11, %c0_12] : memref<1x1x128xf32, #tpu.memory_space<vmem>>, vector<1x1x128xf32>
    tpu.vector_store %arg5[%c0_10, %c0_11, %c0_12], %15 {strides = array<i32>} : memref<1x1x128xf32, #tpu.memory_space<vmem>>, vector<1x1x128xf32>,
    return
  }
  func.func @transform_0(%arg0: i32) -> (i32, i32) {
    %c0_i32 = arith.constant 0 : i32
    %c0_i32_0 = arith.constant 0 : i32
    return %arg0, %c0_i32 : i32, i32
  }
  func.func @transform_1(%arg0: i32) -> (i32, i32) {
    %c0_i32 = arith.constant 0 : i32
    %c0_i32_0 = arith.constant 0 : i32
    %c0_i32_1 = arith.constant 0 : i32
    return %c0_i32, %c0_i32_0 : i32, i32
  }
  func.func @transform_2(%arg0: i32) -> (i32, i32) {
    %c0_i32 = arith.constant 0 : i32
    %c0_i32_0 = arith.constant 0 : i32
    %c0_i32_1 = arith.constant 0 : i32
    return %c0_i32, %c0_i32_0 : i32, i32
  }
  func.func @transform_3(%arg0: i32) -> (i32, i32) {
    %c0_i32 = arith.constant 0 : i32
    %c0_i32_0 = arith.constant 0 : i32
    %c0_i32_1 = arith.constant 0 : i32
    return %c0_i32, %c0_i32_0 : i32, i32
  }
  func.func @transform_4(%arg0: i32) -> (i32, i32, i32) {
    %c0_i32 = arith.constant 0 : i32
    %c0_i32_0 = arith.constant 0 : i32
    %c0_i32_1 = arith.constant 0 : i32
    return %arg0, %c0_i32, %c0_i32_0 : i32, i32, i32
  }
}

</mosaic_0001>

<bundles_post_ra>
// kernel: controller_forward.1
= control target key start
LH: loop header
LB: loop body
LE: loop exit
PB: predicated region body
PF: predicated region fallthrough
CT: control target
= control target key end

     0   :  { %vm44_vm0 = vcmask 261120   ;;  %v574_v22 = vmov 0.0|0.0   ;;  %vm575_vm1 = vmmov 0   ;;  %v576_v23 = vmov 0.0   ;;  %s718_s1 = inlined_call_operand.vmem [shape: f32[32,16], index: 1, kind: input, shape index: {}]   ;;  %s719_s0 = inlined_call_operand.vmem [shape: f32[128,32], index: 0, kind: input, shape index: {}]   ;;  %s720_s2 = inlined_call_operand.vmem [shape: f32[1,16], index: 2, kind: input, shape index: {}]   ;;  %s721_s3 = inlined_call_operand.vmem [shape: f32[1,16], index: 3, kind: input, shape index: {}]   ;;  %s722_s4 = inlined_call_operand.vmem [shape: f32[1,1,128], index: 4, kind: output, shape index: {}]  }
   0x1   :  { %v33_v0 = vld [vmem:[%s718_s1] sm:$0xff]  ;;  %v34_v1 = vld [vmem:[%s718_s1 + $0x8] sm:$0xff]  ;;  %v35_v2 = vld [vmem:[%s718_s1 + $0x10] sm:$0xff]  ;;  %535 = vmatprep.subr.bf16.mxu1 %v574_v22  ;;  %524 = vmatprep.mubr.msk.f32.mxu1 %vm575_vm1, %v576_v23  ;;  %vm255_vm2 = vcmask 130048  }
   0x2   :  { %v527_v3 = vpack.c.bf16 %v34_v1, %v33_v0  ;;  %v36_v4 = vld [vmem:[%s718_s1 + $0x18] sm:$0xff]  ;;  %v17_v5 = vld [vmem:[%s719_s0] sm:$0xff]  ;;  %v18_v7 = vld [vmem:[%s719_s0 + $0x8] sm:$0xff] }
   0x3   :  { %v531_v6 = vpack.c.bf16 %v36_v4, %v35_v2  ;;  %468 = vmatprep.mubr.msk.f32.mxu0 %vm44_vm0, %v17_v5  ;;  %v19_v8 = vld [vmem:[%s719_s0 + $0x10] sm:$0xff]  ;;  %v20_v9 = vld [vmem:[%s719_s0 + $0x18] sm:$0xff]  ;;  %v21_v10 = vld [vmem:[%s719_s0 + $0x20] sm:$0xff] }
   0x4   :  { %528 = vmatprep.subr.bf16.mxu0 %v527_v3  ;;  %v22_v11 = vld [vmem:[%s719_s0 + $0x28] sm:$0xff]  ;;  %v23_v12 = vld [vmem:[%s719_s0 + $0x30] sm:$0xff]  ;;  %v24_v13 = vld [vmem:[%s719_s0 + $0x38] sm:$0xff] }
   0x5   :  { %530 = vmatpush3.bf16.msra.mxu0 %v527_v3  ;;  %v25_v14 = vld [vmem:[%s719_s0 + $0x40] sm:$0xff]  ;;  %v26_v15 = vld [vmem:[%s719_s0 + $0x48] sm:$0xff]  ;;  %v27_v16 = vld [vmem:[%s719_s0 + $0x50] sm:$0xff] }
   0x6   :  { %532 = vmatprep.subr.bf16.mxu0 %v531_v6  ;;  %v28_v17 = vld [vmem:[%s719_s0 + $0x58] sm:$0xff]  ;;  %v29_v18 = vld [vmem:[%s719_s0 + $0x60] sm:$0xff]  ;;  %v30_v19 = vld [vmem:[%s719_s0 + $0x68] sm:$0xff] }
   0x7   :  { %v31_v20 = vld [vmem:[%s719_s0 + $0x70] sm:$0xff]  ;;  %v32_v21 = vld [vmem:[%s719_s0 + $0x78] sm:$0xff]  ;;  %v388_v24 = vld [vmem:[%s720_s2] ss:$0 sm:$0xff] }
   0x8   :  { %vm684_vm3 = vmpackc.low %vm255_vm2, %vm255_vm2 }
   0x9   :  { %534 = vmatpush3.bf16.msra.mxu0 %v531_v6 }
   0xc   :  { %469 = vmatmul.mubr.msk.f32.vlgmr.msra.gmra.mrb[0].mxu0 %vm44_vm0, %v18_v7 }
   0xd   :  { %471 = vmatprep.mubr.msk.f32.mxu0 %vm44_vm0, %v19_v8 }
  0x10   :  { %472 = vmatmul.mubr.msk.f32.gmra.mrb[2].mxu0 %vm44_vm0, %v20_v9 }
  0x11   :  { %474 = vmatprep.mubr.msk.f32.mxu0 %vm44_vm0, %v21_v10 }
  0x14   :  { %475 = vmatmul.mubr.msk.f32.gmra.mrb[4].mxu0 %vm44_vm0, %v22_v11 }
  0x15   :  { %477 = vmatprep.mubr.msk.f32.mxu0 %vm44_vm0, %v23_v12 }
  0x18   :  { %478 = vmatmul.mubr.msk.f32.gmra.mrb[6].mxu0 %vm44_vm0, %v24_v13 }
  0x19   :  { %480 = vmatprep.mubr.msk.f32.mxu0 %vm44_vm0, %v25_v14 }
  0x1c   :  { %481 = vmatmul.mubr.msk.f32.gmra.mrb[8].mxu0 %vm44_vm0, %v26_v15 }
  0x1d   :  { %483 = vmatprep.mubr.msk.f32.mxu0 %vm44_vm0, %v27_v16 }
  0x20   :  { %484 = vmatmul.mubr.msk.f32.gmra.mrb[10].mxu0 %vm44_vm0, %v28_v17 }
  0x21   :  { %486 = vmatprep.mubr.msk.f32.mxu0 %vm44_vm0, %v29_v18  ;;  %v254_v18 = vld [vmem:[%s721_s3] sm:$0x1] }
  0x24   :  { %487 = vmatmul.mubr.msk.f32.gmra.mrb[12].mxu0 %vm44_vm0, %v30_v19 }
  0x25   :  { %489 = vmatprep.mubr.msk.f32.mxu0 %vm44_vm0, %v31_v20 }
  0x28   :  { %490 = vmatmul.mubr.msk.f32.gmra.mrb[14].mxu0 %vm44_vm0, %v32_v21 }
  0xdf   :  { %v470_v25 = vpop.f32.mrb[0].mxu0 }
  0xe0   :  { %v165_v26 = vadd.f32 %v470_v25, %v388_v24  ;;  %v159_v27 = vpop.f32.mrb[1].mxu0 }
  0xe1   :  { %v160_v28 = vadd.f32 %v388_v24, %v159_v27 }
  0xe2   :  { %v239_v29 = vmax.f32 %v165_v26, 0.0 }
  0xe3   :  { %v238_v30 = vmax.f32 %v160_v28, 0.0  ;;  %v473_v31 = vpop.f32.mrb[2].mxu0 }
  0xe4   :  { %v175_v32 = vadd.f32 %v473_v31, %v388_v24  ;;  %v169_v33 = vpop.f32.mrb[3].mxu0 }
  0xe5   :  { %v536_v35 = vpack.c.bf16 %v239_v29, %v238_v30  ;;  %v170_v36 = vadd.f32 %v388_v24, %v169_v33 }
  0xe6   :  { %v241_v37 = vmax.f32 %v175_v32, 0.0 }
  0xe7   :  { %v240_v38 = vmax.f32 %v170_v36, 0.0  ;;  %538 = vmatpush3.bf16.xpose.msk.msra.mxu1 %vm684_vm3, %v536_v35  ;;  %v476_v39 = vpop.f32.mrb[4].mxu0 }
  0xe8   :  { %v185_v40 = vadd.f32 %v476_v39, %v388_v24  ;;  %539 = vmatprep.subr.bf16.mxu1 %v574_v22  ;;  %v179_v41 = vpop.f32.mrb[5].mxu0 }
  0xe9   :  { %v540_v42 = vpack.c.bf16 %v241_v37, %v240_v38  ;;  %v180_v43 = vadd.f32 %v388_v24, %v179_v41 }
  0xea   :  { %v243_v44 = vmax.f32 %v185_v40, 0.0 }
  0xeb   :  { %v242_v45 = vmax.f32 %v180_v43, 0.0  ;;  %v479_v46 = vpop.f32.mrb[6].mxu0 }
  0xec   :  { %v195_v47 = vadd.f32 %v479_v46, %v388_v24  ;;  %v189_v48 = vpop.f32.mrb[7].mxu0 }
  0xed   :  { %v544_v49 = vpack.c.bf16 %v243_v44, %v242_v45  ;;  %v190_v50 = vadd.f32 %v388_v24, %v189_v48 }
  0xee   :  { %v245_v51 = vmax.f32 %v195_v47, 0.0 }
  0xef   :  { %542 = vmatpush3.bf16.xpose.msk.msra.mxu1 %vm684_vm3, %v540_v42  ;;  %v244_v52 = vmax.f32 %v190_v50, 0.0  ;;  %v482_v53 = vpop.f32.mrb[8].mxu0 }
  0xf0   :  { %543 = vmatprep.subr.bf16.mxu1 %v574_v22  ;;  %v205_v54 = vadd.f32 %v482_v53, %v388_v24  ;;  %v199_v55 = vpop.f32.mrb[9].mxu0 }
  0xf1   :  { %v548_v56 = vpack.c.bf16 %v245_v51, %v244_v52  ;;  %v200_v57 = vadd.f32 %v388_v24, %v199_v55 }
  0xf2   :  { %v247_v58 = vmax.f32 %v205_v54, 0.0 }
  0xf3   :  { %v246_v59 = vmax.f32 %v200_v57, 0.0  ;;  %v485_v60 = vpop.f32.mrb[10].mxu0 }
  0xf4   :  { %v215_v61 = vadd.f32 %v485_v60, %v388_v24  ;;  %v209_v62 = vpop.f32.mrb[11].mxu0 }
  0xf5   :  { %v552_v63 = vpack.c.bf16 %v247_v58, %v246_v59  ;;  %v210_v0 = vadd.f32 %v388_v24, %v209_v62 }
  0xf6   :  { %v249_v1 = vmax.f32 %v215_v61, 0.0 }
  0xf7   :  { %546 = vmatpush3.bf16.xpose.msk.msra.mxu1 %vm684_vm3, %v544_v49  ;;  %v248_v2 = vmax.f32 %v210_v0, 0.0  ;;  %v488_v3 = vpop.f32.mrb[12].mxu0 }
  0xf8   :  { %547 = vmatprep.subr.bf16.mxu1 %v574_v22  ;;  %v225_v4 = vadd.f32 %v488_v3, %v388_v24  ;;  %v219_v5 = vpop.f32.mrb[13].mxu0 }
  0xf9   :  { %v556_v6 = vpack.c.bf16 %v249_v1, %v248_v2  ;;  %v220_v7 = vadd.f32 %v388_v24, %v219_v5 }
  0xfa   :  { %v251_v8 = vmax.f32 %v225_v4, 0.0 }
  0xfb   :  { %v250_v9 = vmax.f32 %v220_v7, 0.0  ;;  %v491_v10 = vpop.f32.mrb[14].mxu0 }
  0xfc   :  { %v235_v11 = vadd.f32 %v491_v10, %v388_v24  ;;  %v229_v12 = vpop.f32.mrb[15].mxu0 }
  0xfd   :  { %v560_v13 = vpack.c.bf16 %v251_v8, %v250_v9  ;;  %v230_v14 = vadd.f32 %v388_v24, %v229_v12 }
  0xfe   :  { %v253_v15 = vmax.f32 %v235_v11, 0.0 }
  0xff   :  { %550 = vmatpush3.bf16.xpose.msk.msra.mxu1 %vm684_vm3, %v548_v56  ;;  %v252_v16 = vmax.f32 %v230_v14, 0.0 }
 0x100   :  { %551 = vmatprep.subr.bf16.mxu1 %v574_v22 }
 0x101   :  { %v564_v17 = vpack.c.bf16 %v253_v15, %v252_v16 }
 0x107   :  { %554 = vmatpush3.bf16.xpose.msk.msra.mxu1 %vm684_vm3, %v552_v63 }
 0x108   :  { %555 = vmatprep.subr.bf16.mxu1 %v574_v22 }
 0x10f   :  { %558 = vmatpush3.bf16.xpose.msk.msra.mxu1 %vm684_vm3, %v556_v6 }
 0x110   :  { %559 = vmatprep.subr.bf16.mxu1 %v574_v22 }
 0x117   :  { %562 = vmatpush3.bf16.xpose.msk.msra.mxu1 %vm684_vm3, %v560_v13 }
 0x118   :  { %563 = vmatprep.subr.bf16.mxu1 %v574_v22 }
 0x11f   :  { %566 = vmatpush3.bf16.xpose.msk.msra.mxu1 %vm684_vm3, %v564_v17 }
 0x126   :  { %525 = vmatmul.mubr.msk.f32.vlgmr.msra.gmra.mrb[0].mxu1 %vm255_vm2, %v254_v18 }
 0x1f9   :  { %v373_v19 = vpop.f32.mrb[0].mxu1 }
 0x1fa   :  { %v422_v20 = vmul.f32 -1.442695, %v373_v19  ;;  %v526_v21 = vpop.f32.mrb[1].mxu1 }
 0x1fc   :  { %570 = vpow2.f32 %v422_v20 }
 0x206   :  { %v571_v23 = vpop.eup %570 }
 0x207   :  { %v380_v24 = vadd.f32 1.0, %v571_v23 }
 0x209   :  { %572 = vrcp.f32 %v380_v24 }
 0x213   :  { %v573_v25 = vpop.eup %572 }
 0x214   :  { %383 = vst [vmem:[%s722_s4] sm:$0x1] %v573_v25 }

</bundles_post_ra>
